<compile_context>
chip_gen: v7x
topology: tpu7x:2x2x1
jax: 0.10.0
libtpu: 0.0.40
codegen_flags: <defaults>
</compile_context>

<pallas_src>
import jax
import jax.numpy as jnp
from jax.experimental import pallas as pl
from jax.experimental.pallas import tpu as pltpu

SELU_ALPHA = 1.6732632423543772
SELU_SCALE = 1.0507009873554805
BN_EPS = 1e-5


def _selu(x):
    return SELU_SCALE * jnp.where(x > 0, x, SELU_ALPHA * (jnp.exp(x) - 1.0))


def _fold_conv3x3(w_oihw, W):
    """(Co, Ci, 3, 3) OIHW -> (3, W*Ci, W*Co) f32 banded-over-W weight matrices.

    BigW[dy][u*Ci+ci, w*Co+co] = w[co, ci, dy, dx] with u = w + dx - 1 (pad=1);
    taps falling outside [0, W) are absent (zero band) so the W zero-padding is
    folded into the weights and the kernel never materializes W windows.
    """
    w_hwio = jnp.transpose(w_oihw, (2, 3, 1, 0)).astype(jnp.float32)  # (3,3,Ci,Co)
    ci, co = w_hwio.shape[2], w_hwio.shape[3]
    per_dy = []
    for dy in range(3):
        m = jnp.zeros((W * ci, W * co), jnp.float32)
        for dx in range(3):
            band = jnp.eye(W, W, k=1 - dx, dtype=jnp.float32)  # [u,w]=1 iff u==w+dx-1
            m = m + jnp.kron(band, w_hwio[dy, dx])
        per_dy.append(m)
    return jnp.stack(per_dy)


def fold_block_params(params, W):
    """One-time parameter prep (call at load time, NOT per forward call).

    Produces dy-stacked banded bf16 matmul weights and lane-dense BN/residual
    affine rows so the per-call wrapper does no weight work at all.
    """
    w1, b1, g1, be1, w2, b2, g2, be2, wr, br = params
    del b1, b2  # conv bias before a batch-stat BatchNorm is exactly cancelled by it
    Cout = w1.shape[0]
    w1b = _fold_conv3x3(w1, W)                                    # (3, W*Cin,  W*Cout)
    w2b = _fold_conv3x3(w2, W)                                    # (3, W*Cout, W*Cout)
    # K-stacked in band order [center(dy=1) | up(dy=0) | down(dy=2)], matching the
    # in-kernel LHS band layout -> one fused MXU matmul per conv.
    w1stk = jnp.concatenate([w1b[1], w1b[0], w1b[2]], axis=0).astype(jnp.bfloat16)
    w2stk = jnp.concatenate([w2b[1], w2b[0], w2b[2]], axis=0).astype(jnp.bfloat16)
    wrb = jnp.kron(jnp.eye(W, dtype=jnp.float32),
                   jnp.transpose(wr[:, :, 0, 0]).astype(jnp.float32)).astype(jnp.bfloat16)
    # 0/1 matrix: (k, W*Co) stats @ cred -> per-channel sums broadcast over all w.
    cred = jnp.kron(jnp.ones((W, W), jnp.float32), jnp.eye(Cout, dtype=jnp.float32))
    tile = lambda v: jnp.tile(v.astype(jnp.float32), W).reshape(1, W * Cout)
    # TODO(synk): for large W / channel counts, tile the O(W^2*Ci*Co) banded weights
    # into W-band blocks (or fall back to per-dx taps) to stay inside v7x's 64 MiB VMEM.
    return (w1stk, w2stk, wrb, tile(g1), tile(be1), tile(g2), tile(be2), tile(br), cred)


def _vmem_cap_bytes():
    # Scoped-VMEM cap with >=16 MiB headroom for compiler scratch / double buffers:
    # ~48 MiB on v7x (64 MiB per TensorCore), ~112 MiB on v5e/v6e (128 MiB).
    try:
        phys = int(pltpu.get_tpu_info().vmem_capacity_bytes)
    except Exception:
        phys = 64 * 2**20
    return max(32 * 2**20, phys - 16 * 2**20)


def _residual_conv_block_folded(xf, folded, spatial_w):
    """Folded-layout forward: xf (N, H, W*Cin) f32 -> (N, H, W*Cout) f32."""
    w1stk, w2stk, wrb, g1f, be1f, g2f, be2f, brf, cred = folded
    N, H, WCi = xf.shape
    WCo = wrb.shape[1]
    NH = N * H
    inv_cnt = 1.0 / float(N * H * spatial_w)

    def kernel(x_ref, w1_ref, w2_ref, wr_ref, g1_ref, be1_ref, g2_ref, be2_ref,
               brf_ref, cred_ref, out_ref, l1_ref, l2_ref):
        cred_m = cred_ref[...]

        def batchnorm(y2d, gamma_f, beta_f):
            # One-pass batch stats (biased var), folded into a single scale+shift.
            # Both channel reduce+broadcasts (mean, E[x^2]) share ONE tiny matmul.
            s1 = jnp.sum(y2d, axis=0, keepdims=True)               # (1, W*Co)
            s2 = jnp.sum(y2d * y2d, axis=0, keepdims=True)         # (1, W*Co)
            red = jnp.dot(jnp.concatenate([s1, s2], axis=0), cred_m,
                          preferred_element_type=jnp.float32) * inv_cnt
            mean, ex2 = red[0:1, :], red[1:2, :]
            scale = gamma_f * jax.lax.rsqrt(ex2 - mean * mean + BN_EPS)
            shift = beta_f - mean * scale
            return y2d * scale + shift

        def stage_lhs(lhs_ref, v3d, width):
            # Fused 3-tap bf16 LHS, band order [center | up | down]; the H
            # zero-padding is written directly into the shifted bands.
            zrow = jnp.zeros((N, 1, width), jnp.bfloat16)
            lhs_ref[:, :, 0:width] = v3d                                   # x[h]
            lhs_ref[:, 0:1, width:2 * width] = zrow                        # x[h-1]
            lhs_ref[:, 1:H, width:2 * width] = v3d[:, 0:H - 1, :]
            lhs_ref[:, 0:H - 1, 2 * width:3 * width] = v3d[:, 1:H, :]      # x[h+1]
            lhs_ref[:, H - 1:H, 2 * width:3 * width] = zrow

        # ---- conv1: stage bf16 fused LHS, ONE K=3*W*Cin MXU matmul ---------------
        stage_lhs(l1_ref, x_ref[...].astype(jnp.bfloat16), WCi)
        acc1 = jnp.dot(l1_ref[...].reshape(NH, 3 * WCi), w1_ref[...],
                       preferred_element_type=jnp.float32)          # (NH, W*Cout)
        act1 = _selu(batchnorm(acc1, g1_ref[...], be1_ref[...]))

        # ---- conv2: stage bf16 fused LHS, ONE K=3*W*Cout MXU matmul --------------
        stage_lhs(l2_ref, act1.astype(jnp.bfloat16).reshape(N, H, WCo), WCo)
        acc2 = jnp.dot(l2_ref[...].reshape(NH, 3 * WCo), w2_ref[...],
                       preferred_element_type=jnp.float32)

        # ---- residual 1x1 conv, done late (short f32 live range); LHS re-read
        #      from the bf16 center band of the conv1 staging scratch -------------
        xc = l1_ref[:, :, 0:WCi].reshape(NH, WCi)
        residual = jnp.dot(xc, wr_ref[...],
                           preferred_element_type=jnp.float32) + brf_ref[...]

        y = batchnorm(acc2, g2_ref[...], be2_ref[...]) + residual
        out_ref[...] = _selu(y).reshape(N, H, WCo)                  # lane-dense store

    resident_bytes = (4 * (xf.size + N * H * WCo + cred.size + 5 * WCo)
                      + 2 * (w1stk.size + w2stk.size + wrb.size
                             + N * H * 3 * (WCi + WCo)))
    vmem_limit = int(min(_vmem_cap_bytes(), max(32 * 2**20, 8 * resident_bytes)))

    vmem = pl.BlockSpec(memory_space=pltpu.MemorySpace.VMEM)
    # TODO(synk): add a grid over N (or N*H row tiles) with a two-phase BatchNorm
    # (per-core partial s1/s2 + tiny combine) to use both v7x TensorCores and to
    # overlap DMA/compute once activations exceed a few MiB.
    return pl.pallas_call(
        kernel,
        out_shape=jax.ShapeDtypeStruct((N, H, WCo), jnp.float32),
        in_specs=[vmem] * 10,
        out_specs=vmem,
        scratch_shapes=[pltpu.VMEM((N, H, 3 * WCi), jnp.bfloat16),
                        pltpu.VMEM((N, H, 3 * WCo), jnp.bfloat16)],
        compiler_params=pltpu.CompilerParams(vmem_limit_bytes=vmem_limit),
    )(xf, w1stk, w2stk, wrb, g1f, be1f, g2f, be2f, brf, cred)


# Folded-layout entry point: use this (and keep activations in (N, H, W*C)) when
# stacking blocks, to avoid the two per-block HBM transpose passes of NCHW.
residual_conv_block_folded = jax.jit(_residual_conv_block_folded, static_argnums=2)


@jax.jit
def residual_conv_block(x_nchw, folded):
    """NCHW-compat wrapper matching the PyTorch module's layout."""
    N, Cin, H, W = x_nchw.shape
    Cout = folded[2].shape[1] // W                      # wrb: (W*Cin, W*Cout)
    xf = jnp.transpose(x_nchw, (0, 2, 3, 1)).astype(jnp.float32).reshape(N, H, W * Cin)
    outf = _residual_conv_block_folded(xf, folded, W)
    return jnp.transpose(outf.reshape(N, H, W, Cout), (0, 3, 1, 2))


def make_params(key, c_in, c_out):
    ks = jax.random.split(key, 6)
    w1 = 0.1 * jax.random.normal(ks[0], (c_out, c_in, 3, 3), jnp.float32)   # OIHW
    w2 = 0.1 * jax.random.normal(ks[1], (c_out, c_out, 3, 3), jnp.float32)
    wr = 0.1 * jax.random.normal(ks[2], (c_out, c_in, 1, 1), jnp.float32)
    b1 = 0.05 * jax.random.normal(ks[3], (c_out,), jnp.float32)
    b2 = 0.05 * jax.random.normal(ks[4], (c_out,), jnp.float32)
    br = 0.05 * jax.random.normal(ks[5], (c_out,), jnp.float32)
    g1 = jnp.ones((c_out,), jnp.float32)
    be1 = jnp.zeros((c_out,), jnp.float32)
    g2 = jnp.ones((c_out,), jnp.float32)
    be2 = jnp.zeros((c_out,), jnp.float32)
    return (w1, b1, g1, be1, w2, b2, g2, be2, wr, br)


def reference(x_nchw, params):
    """Pure-JAX reference (XLA convs, f32, includes the cancelled conv biases)."""
    w1, b1, g1, be1, w2, b2, g2, be2, wr, br = params
    x = jnp.transpose(x_nchw, (0, 2, 3, 1))

    def conv(x, w_oihw, b, pad):
        w = jnp.transpose(w_oihw, (2, 3, 1, 0))
        y = jax.lax.conv_general_dilated(
            x, w, (1, 1), pad, dimension_numbers=('NHWC', 'HWIO', 'NHWC'))
        return y + b.reshape(1, 1, 1, -1)

    def bn(x, g, bt):
        m = jnp.mean(x, axis=(0, 1, 2), keepdims=True)
        v = jnp.mean((x - m) ** 2, axis=(0, 1, 2), keepdims=True)
        return (x - m) * jax.lax.rsqrt(v + BN_EPS) * g.reshape(1, 1, 1, -1) \
            + bt.reshape(1, 1, 1, -1)

    res = conv(x, wr, br, 'VALID')
    y = conv(x, w1, b1, ((1, 1), (1, 1)))
    y = _selu(bn(y, g1, be1))
    y = conv(y, w2, b2, ((1, 1), (1, 1)))
    y = _selu(bn(y, g2, be2) + res)
    return jnp.transpose(y, (0, 3, 1, 2))


if __name__ == "__main__":
    key = jax.random.PRNGKey(0)
    kx, kp = jax.random.split(key)

    N, C_IN, C_OUT, H, W = 2, 4, 8, 16, 16
    x = jax.random.normal(kx, (N, C_IN, H, W), jnp.float32)
    params = make_params(kp, C_IN, C_OUT)

    folded = fold_block_params(params, W)       # one-time prep, outside the hot path
    out = jax.block_until_ready(residual_conv_block(x, folded))
    ref = reference(x, params)

    assert out.shape == (N, C_OUT, H, W), out.shape
    # bf16 matmul inputs (f32 accumulation) -> relaxed tolerance vs. f32 reference
    assert jnp.allclose(out, ref, atol=1e-1, rtol=5e-2), \
        f"max abs err {jnp.max(jnp.abs(out - ref))}"

    print("KERNEL_OK")
</pallas_src>

<mosaic_0001>
module attributes {stable_mosaic.version = 11 : i64} {
  func.func @kernel(%arg0: memref<2x16x64xf32, #tpu.memory_space<vmem>>, %arg1: memref<192x128xbf16, #tpu.memory_space<vmem>>, %arg2: memref<384x128xbf16, #tpu.memory_space<vmem>>, %arg3: memref<64x128xbf16, #tpu.memory_space<vmem>>, %arg4: memref<1x128xf32, #tpu.memory_space<vmem>>, %arg5: memref<1x128xf32, #tpu.memory_space<vmem>>, %arg6: memref<1x128xf32, #tpu.memory_space<vmem>>, %arg7: memref<1x128xf32, #tpu.memory_space<vmem>>, %arg8: memref<1x128xf32, #tpu.memory_space<vmem>>, %arg9: memref<128x128xf32, #tpu.memory_space<vmem>>, %arg10: memref<2x16x128xf32, #tpu.memory_space<vmem>>, %arg11: memref<2x16x192xbf16, #tpu.memory_space<vmem>>, %arg12: memref<2x16x384xbf16, #tpu.memory_space<vmem>>) attributes {dimension_semantics = [], scalar_prefetch = 0 : i64, scratch_operands = 2 : i64, tpu.core_type = #tpu.core_type<tc>} {
    %c0 = arith.constant 0 : index
    %c0_0 = arith.constant 0 : index
    %0 = vector.load %arg9[%c0, %c0_0] : memref<128x128xf32, #tpu.memory_space<vmem>>, vector<128x128xf32>
    %c0_1 = arith.constant 0 : index
    %c0_2 = arith.constant 0 : index
    %c0_3 = arith.constant 0 : index
    %1 = vector.load %arg0[%c0_1, %c0_2, %c0_3] : memref<2x16x64xf32, #tpu.memory_space<vmem>>, vector<2x16x64xf32>
    %2 = arith.truncf %1 : vector<2x16x64xf32> to vector<2x16x64xbf16>
    %cst = arith.constant 0.000000e+00 : bf16
    %3 = vector.broadcast %cst : bf16 to vector<2x1x64xbf16>
    %c0_4 = arith.constant 0 : index
    %c0_5 = arith.constant 0 : index
    %c0_6 = arith.constant 0 : index
    %4 = vector.load %arg11[%c0_4, %c0_5, %c0_6] : memref<2x16x192xbf16, #tpu.memory_space<vmem>>, vector<2x16x64xbf16>
    tpu.vector_store %arg11[%c0_4, %c0_5, %c0_6], %2 {strides = array<i32>} : memref<2x16x192xbf16, #tpu.memory_space<vmem>>, vector<2x16x64xbf16>,
    %c0_7 = arith.constant 0 : index
    %c0_8 = arith.constant 0 : index
    %c64 = arith.constant 64 : index
    %5 = vector.load %arg11[%c0_7, %c0_8, %c64] : memref<2x16x192xbf16, #tpu.memory_space<vmem>>, vector<2x1x64xbf16>
    tpu.vector_store %arg11[%c0_7, %c0_8, %c64], %3 {strides = array<i32>} : memref<2x16x192xbf16, #tpu.memory_space<vmem>>, vector<2x1x64xbf16>,
    %6 = vector.extract_strided_slice %2 {offsets = [0, 0, 0], sizes = [2, 15, 64], strides = [1, 1, 1]} : vector<2x16x64xbf16> to vector<2x15x64xbf16>
    %c0_9 = arith.constant 0 : index
    %c1 = arith.constant 1 : index
    %c64_10 = arith.constant 64 : index
    %7 = vector.load %arg11[%c0_9, %c1, %c64_10] : memref<2x16x192xbf16, #tpu.memory_space<vmem>>, vector<2x15x64xbf16>
    tpu.vector_store %arg11[%c0_9, %c1, %c64_10], %6 {strides = array<i32>} : memref<2x16x192xbf16, #tpu.memory_space<vmem>>, vector<2x15x64xbf16>,
    %8 = vector.extract_strided_slice %2 {offsets = [0, 1, 0], sizes = [2, 15, 64], strides = [1, 1, 1]} : vector<2x16x64xbf16> to vector<2x15x64xbf16>
    %c0_11 = arith.constant 0 : index
    %c0_12 = arith.constant 0 : index
    %c128 = arith.constant 128 : index
    %9 = vector.load %arg11[%c0_11, %c0_12, %c128] : memref<2x16x192xbf16, #tpu.memory_space<vmem>>, vector<2x15x64xbf16>
    tpu.vector_store %arg11[%c0_11, %c0_12, %c128], %8 {strides = array<i32>} : memref<2x16x192xbf16, #tpu.memory_space<vmem>>, vector<2x15x64xbf16>,
    %c0_13 = arith.constant 0 : index
    %c15 = arith.constant 15 : index
    %c128_14 = arith.constant 128 : index
    %10 = vector.load %arg11[%c0_13, %c15, %c128_14] : memref<2x16x192xbf16, #tpu.memory_space<vmem>>, vector<2x1x64xbf16>
    tpu.vector_store %arg11[%c0_13, %c15, %c128_14], %3 {strides = array<i32>} : memref<2x16x192xbf16, #tpu.memory_space<vmem>>, vector<2x1x64xbf16>,
    %c0_15 = arith.constant 0 : index
    %c0_16 = arith.constant 0 : index
    %c0_17 = arith.constant 0 : index
    %11 = vector.load %arg11[%c0_15, %c0_16, %c0_17] : memref<2x16x192xbf16, #tpu.memory_space<vmem>>, vector<2x16x192xbf16>
    %12 = vector.shape_cast %11 : vector<2x16x192xbf16> to vector<32x192xbf16>
    %c0_18 = arith.constant 0 : index
    %c0_19 = arith.constant 0 : index
    %13 = vector.load %arg1[%c0_18, %c0_19] : memref<192x128xbf16, #tpu.memory_space<vmem>>, vector<192x128xbf16>
    %cst_20 = arith.constant dense<0.000000e+00> : vector<32x128xf32>
    %14 = tpu.matmul %12, %13, %cst_20 {dimension_numbers = #tpu.dot_dimension_numbers<[1], [0], [0], [1], [0, 0, 1, 1], [], []>} : vector<32x192xbf16>, vector<192x128xbf16>, vector<32x128xf32> -> vector<32x128xf32>
    %c0_21 = arith.constant 0 : index
    %c0_22 = arith.constant 0 : index
    %15 = vector.load %arg4[%c0_21, %c0_22] : memref<1x128xf32, #tpu.memory_space<vmem>>, vector<1x128xf32>
    %c0_23 = arith.constant 0 : index
    %c0_24 = arith.constant 0 : index
    %16 = vector.load %arg5[%c0_23, %c0_24] : memref<1x128xf32, #tpu.memory_space<vmem>>, vector<1x128xf32>
    %cst_25 = arith.constant dense<0.000000e+00> : vector<128xf32>
    %17 = vector.multi_reduction <add>, %14, %cst_25 [0] : vector<32x128xf32> to vector<128xf32>
    %18 = vector.shape_cast %17 : vector<128xf32> to vector<1x128xf32>
    %19 = arith.mulf %14, %14 : vector<32x128xf32>
    %cst_26 = arith.constant dense<0.000000e+00> : vector<128xf32>
    %20 = vector.multi_reduction <add>, %19, %cst_26 [0] : vector<32x128xf32> to vector<128xf32>
    %21 = vector.shape_cast %20 : vector<128xf32> to vector<1x128xf32>
    %22 = tpu.concatenate %18, %21 in 0 : vector<1x128xf32>, vector<1x128xf32> -> vector<2x128xf32>
    %cst_27 = arith.constant dense<0.000000e+00> : vector<2x128xf32>
    %23 = tpu.matmul %22, %0, %cst_27 {dimension_numbers = #tpu.dot_dimension_numbers<[1], [0], [0], [1], [0, 0, 1, 1], [], []>} : vector<2x128xf32>, vector<128x128xf32>, vector<2x128xf32> -> vector<2x128xf32>
    %cst_28 = arith.constant 0.001953125 : f32
    %24 = vector.broadcast %cst_28 : f32 to vector<2x128xf32>
    %25 = arith.mulf %23, %24 : vector<2x128xf32>
    %26 = vector.extract_strided_slice %25 {offsets = [0, 0], sizes = [1, 128], strides = [1, 1]} : vector<2x128xf32> to vector<1x128xf32>
    %27 = vector.extract_strided_slice %25 {offsets = [1, 0], sizes = [1, 128], strides = [1, 1]} : vector<2x128xf32> to vector<1x128xf32>
    %28 = arith.mulf %26, %26 : vector<1x128xf32>
    %29 = arith.subf %27, %28 : vector<1x128xf32>
    %cst_29 = arith.constant 9.99999974E-6 : f32
    %30 = vector.broadcast %cst_29 : f32 to vector<1x128xf32>
    %31 = arith.addf %29, %30 : vector<1x128xf32>
    %32 = math.rsqrt %31 : vector<1x128xf32>
    %33 = arith.mulf %15, %32 : vector<1x128xf32>
    %34 = arith.mulf %26, %33 : vector<1x128xf32>
    %35 = arith.subf %16, %34 : vector<1x128xf32>
    %36 = vector.broadcast %33 : vector<1x128xf32> to vector<32x128xf32>
    %37 = arith.mulf %14, %36 : vector<32x128xf32>
    %38 = vector.broadcast %35 : vector<1x128xf32> to vector<32x128xf32>
    %39 = arith.addf %37, %38 : vector<32x128xf32>
    %cst_30 = arith.constant 0.000000e+00 : f32
    %40 = vector.broadcast %cst_30 : f32 to vector<32x128xf32>
    %41 = arith.cmpf ogt, %39, %40 : vector<32x128xf32>
    %42 = math.exp %39 : vector<32x128xf32>
    %cst_31 = arith.constant 1.000000e+00 : f32
    %43 = vector.broadcast %cst_31 : f32 to vector<32x128xf32>
    %44 = arith.subf %42, %43 : vector<32x128xf32>
    %cst_32 = arith.constant 1.67326319 : f32
    %45 = vector.broadcast %cst_32 : f32 to vector<32x128xf32>
    %46 = arith.mulf %45, %44 : vector<32x128xf32>
    %47 = arith.select %41, %39, %46 : vector<32x128xi1>, vector<32x128xf32>
    %cst_33 = arith.constant 1.05070102 : f32
    %48 = vector.broadcast %cst_33 : f32 to vector<32x128xf32>
    %49 = arith.mulf %48, %47 : vector<32x128xf32>
    %50 = arith.truncf %49 : vector<32x128xf32> to vector<32x128xbf16>
    %51 = vector.shape_cast %50 : vector<32x128xbf16> to vector<2x16x128xbf16>
    %cst_34 = arith.constant 0.000000e+00 : bf16
    %52 = vector.broadcast %cst_34 : bf16 to vector<2x1x128xbf16>
    %c0_35 = arith.constant 0 : index
    %c0_36 = arith.constant 0 : index
    %c0_37 = arith.constant 0 : index
    %53 = vector.load %arg12[%c0_35, %c0_36, %c0_37] : memref<2x16x384xbf16, #tpu.memory_space<vmem>>, vector<2x16x128xbf16>
    tpu.vector_store %arg12[%c0_35, %c0_36, %c0_37], %51 {strides = array<i32>} : memref<2x16x384xbf16, #tpu.memory_space<vmem>>, vector<2x16x128xbf16>,
    %c0_38 = arith.constant 0 : index
    %c0_39 = arith.constant 0 : index
    %c128_40 = arith.constant 128 : index
    %54 = vector.load %arg12[%c0_38, %c0_39, %c128_40] : memref<2x16x384xbf16, #tpu.memory_space<vmem>>, vector<2x1x128xbf16>
    tpu.vector_store %arg12[%c0_38, %c0_39, %c128_40], %52 {strides = array<i32>} : memref<2x16x384xbf16, #tpu.memory_space<vmem>>, vector<2x1x128xbf16>,
    %55 = vector.extract_strided_slice %51 {offsets = [0, 0, 0], sizes = [2, 15, 128], strides = [1, 1, 1]} : vector<2x16x128xbf16> to vector<2x15x128xbf16>
    %c0_41 = arith.constant 0 : index
    %c1_42 = arith.constant 1 : index
    %c128_43 = arith.constant 128 : index
    %56 = vector.load %arg12[%c0_41, %c1_42, %c128_43] : memref<2x16x384xbf16, #tpu.memory_space<vmem>>, vector<2x15x128xbf16>
    tpu.vector_store %arg12[%c0_41, %c1_42, %c128_43], %55 {strides = array<i32>} : memref<2x16x384xbf16, #tpu.memory_space<vmem>>, vector<2x15x128xbf16>,
    %57 = vector.extract_strided_slice %51 {offsets = [0, 1, 0], sizes = [2, 15, 128], strides = [1, 1, 1]} : vector<2x16x128xbf16> to vector<2x15x128xbf16>
    %c0_44 = arith.constant 0 : index
    %c0_45 = arith.constant 0 : index
    %c256 = arith.constant 256 : index
    %58 = vector.load %arg12[%c0_44, %c0_45, %c256] : memref<2x16x384xbf16, #tpu.memory_space<vmem>>, vector<2x15x128xbf16>
    tpu.vector_store %arg12[%c0_44, %c0_45, %c256], %57 {strides = array<i32>} : memref<2x16x384xbf16, #tpu.memory_space<vmem>>, vector<2x15x128xbf16>,
    %c0_46 = arith.constant 0 : index
    %c15_47 = arith.constant 15 : index
    %c256_48 = arith.constant 256 : index
    %59 = vector.load %arg12[%c0_46, %c15_47, %c256_48] : memref<2x16x384xbf16, #tpu.memory_space<vmem>>, vector<2x1x128xbf16>
    tpu.vector_store %arg12[%c0_46, %c15_47, %c256_48], %52 {strides = array<i32>} : memref<2x16x384xbf16, #tpu.memory_space<vmem>>, vector<2x1x128xbf16>,
    %c0_49 = arith.constant 0 : index
    %c0_50 = arith.constant 0 : index
    %c0_51 = arith.constant 0 : index
    %60 = vector.load %arg12[%c0_49, %c0_50, %c0_51] : memref<2x16x384xbf16, #tpu.memory_space<vmem>>, vector<2x16x384xbf16>
    %61 = vector.shape_cast %60 : vector<2x16x384xbf16> to vector<32x384xbf16>
    %c0_52 = arith.constant 0 : index
    %c0_53 = arith.constant 0 : index
    %62 = vector.load %arg2[%c0_52, %c0_53] : memref<384x128xbf16, #tpu.memory_space<vmem>>, vector<384x128xbf16>
    %cst_54 = arith.constant dense<0.000000e+00> : vector<32x128xf32>
    %63 = tpu.matmul %61, %62, %cst_54 {dimension_numbers = #tpu.dot_dimension_numbers<[1], [0], [0], [1], [0, 0, 1, 1], [], []>} : vector<32x384xbf16>, vector<384x128xbf16>, vector<32x128xf32> -> vector<32x128xf32>
    %c0_55 = arith.constant 0 : index
    %c0_56 = arith.constant 0 : index
    %c0_57 = arith.constant 0 : index
    %64 = vector.load %arg11[%c0_55, %c0_56, %c0_57] : memref<2x16x192xbf16, #tpu.memory_space<vmem>>, vector<2x16x64xbf16>
    %65 = vector.shape_cast %64 : vector<2x16x64xbf16> to vector<32x64xbf16>
    %c0_58 = arith.constant 0 : index
    %c0_59 = arith.constant 0 : index
    %66 = vector.load %arg3[%c0_58, %c0_59] : memref<64x128xbf16, #tpu.memory_space<vmem>>, vector<64x128xbf16>
    %cst_60 = arith.constant dense<0.000000e+00> : vector<32x128xf32>
    %67 = tpu.matmul %65, %66, %cst_60 {dimension_numbers = #tpu.dot_dimension_numbers<[1], [0], [0], [1], [0, 0, 1, 1], [], []>} : vector<32x64xbf16>, vector<64x128xbf16>, vector<32x128xf32> -> vector<32x128xf32>
    %c0_61 = arith.constant 0 : index
    %c0_62 = arith.constant 0 : index
    %68 = vector.load %arg8[%c0_61, %c0_62] : memref<1x128xf32, #tpu.memory_space<vmem>>, vector<1x128xf32>
    %69 = vector.broadcast %68 : vector<1x128xf32> to vector<32x128xf32>
    %70 = arith.addf %67, %69 : vector<32x128xf32>
    %c0_63 = arith.constant 0 : index
    %c0_64 = arith.constant 0 : index
    %71 = vector.load %arg6[%c0_63, %c0_64] : memref<1x128xf32, #tpu.memory_space<vmem>>, vector<1x128xf32>
    %c0_65 = arith.constant 0 : index
    %c0_66 = arith.constant 0 : index
    %72 = vector.load %arg7[%c0_65, %c0_66] : memref<1x128xf32, #tpu.memory_space<vmem>>, vector<1x128xf32>
    %cst_67 = arith.constant dense<0.000000e+00> : vector<128xf32>
    %73 = vector.multi_reduction <add>, %63, %cst_67 [0] : vector<32x128xf32> to vector<128xf32>
    %74 = vector.shape_cast %73 : vector<128xf32> to vector<1x128xf32>
    %75 = arith.mulf %63, %63 : vector<32x128xf32>
    %cst_68 = arith.constant dense<0.000000e+00> : vector<128xf32>
    %76 = vector.multi_reduction <add>, %75, %cst_68 [0] : vector<32x128xf32> to vector<128xf32>
    %77 = vector.shape_cast %76 : vector<128xf32> to vector<1x128xf32>
    %78 = tpu.concatenate %74, %77 in 0 : vector<1x128xf32>, vector<1x128xf32> -> vector<2x128xf32>
    %cst_69 = arith.constant dense<0.000000e+00> : vector<2x128xf32>
    %79 = tpu.matmul %78, %0, %cst_69 {dimension_numbers = #tpu.dot_dimension_numbers<[1], [0], [0], [1], [0, 0, 1, 1], [], []>} : vector<2x128xf32>, vector<128x128xf32>, vector<2x128xf32> -> vector<2x128xf32>
    %cst_70 = arith.constant 0.001953125 : f32
    %80 = vector.broadcast %cst_70 : f32 to vector<2x128xf32>
    %81 = arith.mulf %79, %80 : vector<2x128xf32>
    %82 = vector.extract_strided_slice %81 {offsets = [0, 0], sizes = [1, 128], strides = [1, 1]} : vector<2x128xf32> to vector<1x128xf32>
    %83 = vector.extract_strided_slice %81 {offsets = [1, 0], sizes = [1, 128], strides = [1, 1]} : vector<2x128xf32> to vector<1x128xf32>
    %84 = arith.mulf %82, %82 : vector<1x128xf32>
    %85 = arith.subf %83, %84 : vector<1x128xf32>
    %cst_71 = arith.constant 9.99999974E-6 : f32
    %86 = vector.broadcast %cst_71 : f32 to vector<1x128xf32>
    %87 = arith.addf %85, %86 : vector<1x128xf32>
    %88 = math.rsqrt %87 : vector<1x128xf32>
    %89 = arith.mulf %71, %88 : vector<1x128xf32>
    %90 = arith.mulf %82, %89 : vector<1x128xf32>
    %91 = arith.subf %72, %90 : vector<1x128xf32>
    %92 = vector.broadcast %89 : vector<1x128xf32> to vector<32x128xf32>
    %93 = arith.mulf %63, %92 : vector<32x128xf32>
    %94 = vector.broadcast %91 : vector<1x128xf32> to vector<32x128xf32>
    %95 = arith.addf %93, %94 : vector<32x128xf32>
    %96 = arith.addf %95, %70 : vector<32x128xf32>
    %cst_72 = arith.constant 0.000000e+00 : f32
    %97 = vector.broadcast %cst_72 : f32 to vector<32x128xf32>
    %98 = arith.cmpf ogt, %96, %97 : vector<32x128xf32>
    %99 = math.exp %96 : vector<32x128xf32>
    %cst_73 = arith.constant 1.000000e+00 : f32
    %100 = vector.broadcast %cst_73 : f32 to vector<32x128xf32>
    %101 = arith.subf %99, %100 : vector<32x128xf32>
    %cst_74 = arith.constant 1.67326319 : f32
    %102 = vector.broadcast %cst_74 : f32 to vector<32x128xf32>
    %103 = arith.mulf %102, %101 : vector<32x128xf32>
    %104 = arith.select %98, %96, %103 : vector<32x128xi1>, vector<32x128xf32>
    %cst_75 = arith.constant 1.05070102 : f32
    %105 = vector.broadcast %cst_75 : f32 to vector<32x128xf32>
    %106 = arith.mulf %105, %104 : vector<32x128xf32>
    %107 = vector.shape_cast %106 : vector<32x128xf32> to vector<2x16x128xf32>
    %c0_76 = arith.constant 0 : index
    %c0_77 = arith.constant 0 : index
    %c0_78 = arith.constant 0 : index
    %108 = vector.load %arg10[%c0_76, %c0_77, %c0_78] : memref<2x16x128xf32, #tpu.memory_space<vmem>>, vector<2x16x128xf32>
    tpu.vector_store %arg10[%c0_76, %c0_77, %c0_78], %107 {strides = array<i32>} : memref<2x16x128xf32, #tpu.memory_space<vmem>>, vector<2x16x128xf32>,
    return
  }
}

</mosaic_0001>

<bundles_post_ra>
// kernel: residual_conv_block.1
= control target key start
LH: loop header
LB: loop body
LE: loop exit
PB: predicated region body
PF: predicated region fallthrough
CT: control target
= control target key end

     0   :  { %15 = vsyncpa [#allocation5], 0  ;;  %s1470_s13 = smov [#allocation4]   ;;  %s1909_s0 = inlined_call_operand.vmem [shape: f32[2,16,64], index: 0, kind: input, shape index: {}]   ;;  %s1910_s1 = inlined_call_operand.vmem [shape: bf16[192,128], index: 1, kind: input, shape index: {}]   ;;  %s1911_s2 = inlined_call_operand.vmem [shape: bf16[384,128], index: 2, kind: input, shape index: {}]   ;;  %s1912_s3 = inlined_call_operand.hbm [shape: bf16[64,128], index: 3, kind: input, shape index: {}]   ;;  %s1913_s4 = inlined_call_operand.vmem [shape: f32[1,128], index: 4, kind: input, shape index: {}]   ;;  %s1914_s5 = inlined_call_operand.vmem [shape: f32[1,128], index: 5, kind: input, shape index: {}]   ;;  %s1915_s6 = inlined_call_operand.vmem [shape: f32[1,128], index: 6, kind: input, shape index: {}]   ;;  %s1916_s7 = inlined_call_operand.vmem [shape: f32[1,128], index: 7, kind: input, shape index: {}]   ;;  %s1917_s8 = inlined_call_operand.vmem [shape: f32[1,128], index: 8, kind: input, shape index: {}]   ;;  %s1918_s9 = inlined_call_operand.vmem [shape: f32[128,128], index: 9, kind: input, shape index: {}]   ;;  %s1919_s10 = inlined_call_operand.vmem [shape: f32[2,16,128], index: 10, kind: output, shape index: {}]  }
   0x1   :  { %s27_s14 = sshll.u32 %s1470_s13, 4  ;;  %s1446_s17 = scalar_lea.hbm %s1912_s3, 512  ;;  %s28_s14 = int_to_ptr.vmem [resolvable:$true] %s27_s14 }
   0x2   :  { %p1447_p0 = scmp.ne.s32.totalorder %s1912_s3, %s1446_s17  ;;  %p1450_p1 = scmp.lt.u32.totalorder %s1446_s17, %s1912_s3 }
   0x4   :  { %p1452_p2 = pnand %p1450_p1, %p1447_p0 }
   0x6   :  { %1455 = shalt.err (!%p1452_p2)
}
   0x7   :  { %s1456_s22 = scalar_lea.vmem %s28_s14, 512  ;;  %p1461_p4 = scmp.lt.s32.totalorder %s28_s14, %s28_s14 }
   0x8   :  { %p1457_p3 = scmp.ne.s32.totalorder %s28_s14, %s1456_s22  ;;  %p1462_p5 = scmp.lt.s32.totalorder %s1456_s22, %s1456_s22 }
   0xa   :  { %p1463_p6 = por %p1462_p5, %p1461_p4 }
   0xc   :  { %p1464_p7 = pnand %p1463_p6, %p1457_p3 }
   0xe   :  { %1467 = shalt.err (!%p1464_p7)
}
   0xf   :  { %s1471_s23 = smov 64   ;;  %s1472_s24 = smov 4  }
  0x10   :  { %33 = dma.hbm_to_vmem [thread:$0]  %s1912_s3, 512, %s28_s14, [#allocation5], %s1471_s23, %s1471_s23, %s1472_s24  }
  0x11   :  { %1468 = dma.done.wait [#allocation5], 512  }
  0x12   :  { %1469 = vsyncadd [#allocation5], 4294966784  ;;  %v1473_v0 = vmov 0   ;;  %v66_v1 = vld [vmem:[%s1909_s0] sm:$0xff]  ;;  %v67_v2 = vld [vmem:[%s1909_s0 + $0x8] sm:$0xff]  ;;  %vm72_vm1 = vcmask 523264  }
  0x13   :  { %243 = vmatprep.subr.bf16.mxu0 %v1473_v0  ;;  %vm76_vm0 = vsmask.f32 256  ;;  %v68_v3 = vld [vmem:[%s1909_s0 + $0x10] sm:$0xff]  ;;  %v70_v4 = vpack.c.bf16 %v67_v2, %v66_v1  ;;  %v69_v5 = vld [vmem:[%s1909_s0 + $0x18] sm:$0xff]  ;;  %v1386_v7 = vld [vmem:[%s1910_s1] sm:$0xff]   ;;  %vm75_vm2 = vcmask 1040896  }
  0x14   :  { %v71_v6 = vpack.c.bf16 %v69_v5, %v68_v3  ;;  %v1387_v10 = vld [vmem:[%s1910_s1 + $0x8] sm:$0xff]   ;;  %244 = vmatpush1.bf16.msra.mxu0 %v1386_v7  ;;  %vm120_vm3 = vsmask.f32 7424  ;;  %vm1571_vm4 = vmand %vm75_vm2, %vm76_vm0  ;;  %v1388_v19 = vld [vmem:[%s1910_s1 + $0x10] sm:$0xff]   ;;  %v1474_v20 = vmov 0.0|0.0   ;;  %vm128_vm6 = vcmask 523271  }
  0x15   :  { %v85_v8 = vshrl.u32 %v70_v4, 16  ;;  %v88_v9 = vshll.u32 %v70_v4, 16  ;;  %73 = vst.msk [vmem:[#allocation2] sm:$0xff] %vm72_vm1, %v70_v4  ;;  %245 = vmatprep.subr.bf16.mxu0 %v1473_v0  ;;  %1330 = vmatprep.subr.bf16.mxu1 %v1474_v20  ;;  %vm1583_vm5 = vmand %vm72_vm1, %vm120_vm3  ;;  %v1389_v29 = vld [vmem:[%s1910_s1 + $0x18] sm:$0xff]   ;;  %v122_v30 = vld [vmem:[#allocation2 + $0x8] sm:$0xff]  ;;  %vm104_vm9 = vcmask 1048064  }
  0x16   :  { %74 = vst.msk [vmem:[#allocation2 + $0x10] sm:$0xff] %vm72_vm1, %v71_v6  ;;  %v92_v11 = vshrl.u32 %v71_v6, 16  ;;  %v95_v12 = vshll.u32 %v71_v6, 16  ;;  %v125_v32 = vld [vmem:[#allocation2 + $0x18] sm:$0xff]  ;;  %v1390_v34 = vld [vmem:[%s1910_s1 + $0x20] sm:$0xff]   ;;  %v51_v36 = vld [vmem:[%s1918_s9 + $0x8] sm:$0xff] }
  0x17   :  { %v87_v13 = vrot.slane %v85_v8, 7  ;;  %v113_v14 = vrot.slane %v88_v9, 1  ;;  %vm129_vm7 = vsmask.f32 7966  ;;  %v50_v35 = vld [vmem:[%s1918_s9] sm:$0xff]  ;;  %v1391_v38 = vld [vmem:[%s1910_s1 + $0x28] sm:$0xff]  }
  0x18   :  { %v94_v15 = vrot.slane %v92_v11, 7  ;;  %v115_v16 = vrot.slane %v95_v12, 1  ;;  %246 = vmatpush1.bf16.msra.mxu0 %v1387_v10  ;;  %v1609_v37 = vpack.c.bf16 %v51_v36, %v50_v35  ;;  %vm130_vm8 = vmand %vm128_vm6, %vm129_vm7  ;;  %v1392_v42 = vld [vmem:[%s1910_s1 + $0x30] sm:$0xff]   ;;  %v1393_v44 = vld [vmem:[%s1910_s1 + $0x38] sm:$0xff]   ;;  %vm105_vm10 = vsmask.f32 7938 }
  0x19   :  { %v90_v18 = vor.u32 %v88_v9, %v87_v13  ;;  %v114_v21 = vor.u32 %v113_v14, %v85_v8  ;;  %247 = vmatprep.subr.bf16.mxu0 %v1473_v0  ;;  %v1394_v46 = vld [vmem:[%s1910_s1 + $0x40] sm:$0xff]   ;;  %v1395_v47 = vld [vmem:[%s1910_s1 + $0x48] sm:$0xff]   ;;  %v1396_v48 = vld [vmem:[%s1910_s1 + $0x50] sm:$0xff]   ;;  %vm1475_vm12 = vmmov 0   ;;  %v1476_v13 = vmov 0.0  }
  0x1a   :  { %v97_v22 = vor.u32 %v95_v12, %v94_v15  ;;  %v116_v25 = vor.u32 %v115_v16, %v92_v11  ;;  %1332 = vmatpush3.bf16.msra.mxu1 %v1609_v37  ;;  %v1397_v49 = vld [vmem:[%s1910_s1 + $0x58] sm:$0xff]   ;;  %vm106_vm11 = vmand %vm104_vm9, %vm105_vm10  ;;  %v52_v57 = vld [vmem:[%s1918_s9 + $0x10] sm:$0xff]  ;;  %1260 = vmatprep.mubr.msk.f32.mxu1 %vm1475_vm12, %v1476_v13  ;;  %vm316_vm13 = vcmask 1040384  }
  0x1b   :  { %98 = vrot.lane.b32.xlu0 %v90_v18, %s1471_s23  ;;  %v123_v31 = vsel %vm1583_vm5, %v114_v21, %v122_v30  ;;  %1333 = vmatprep.subr.bf16.mxu1 %v1474_v20  ;;  %v53_v58 = vld [vmem:[%s1918_s9 + $0x18] sm:$0xff]  ;;  %v54_v60 = vld [vmem:[%s1918_s9 + $0x20] sm:$0xff]  ;;  %v55_v61 = vld [vmem:[%s1918_s9 + $0x28] sm:$0xff] }
  0x1c   :  { %v78_v24 = vld [vmem:[#allocation2] sm:$0x1]  ;;  %248 = vmatpush1.bf16.msra.mxu0 %v1388_v19  ;;  %124 = vst [vmem:[#allocation2 + $0x8] sm:$0xff] %v123_v31  ;;  %v126_v33 = vsel %vm1583_vm5, %v116_v25, %v125_v32  ;;  %v1660_v59 = vpack.c.bf16 %v53_v58, %v52_v57  ;;  %v1670_v62 = vpack.c.bf16 %v55_v61, %v54_v60  ;;  %v56_v63 = vld [vmem:[%s1918_s9 + $0x30] sm:$0xff]  ;;  %v59_v3 = vld [vmem:[%s1918_s9 + $0x48] sm:$0xff]  ;;  %vm492_vm5 = vcmask 1047552  }
  0x1d   :  { %v79_v26 = vsel %vm1571_vm4, 0, %v78_v24  ;;  %v81_v27 = vld [vmem:[#allocation2 + $0x10] sm:$0x1]  ;;  %249 = vmatprep.subr.bf16.mxu0 %v1473_v0  ;;  %127 = vst [vmem:[#allocation2 + $0x18] sm:$0xff] %v126_v33  ;;  %v58_v2 = vld [vmem:[%s1918_s9 + $0x40] sm:$0xff]  ;;  %v61_v6 = vld [vmem:[%s1918_s9 + $0x58] sm:$0xff] }
  0x1e   :  { %80 = vst [vmem:[#allocation2] sm:$0x1] %v79_v26  ;;  %v82_v28 = vsel %vm1571_vm4, 0, %v81_v27  ;;  %1335 = vmatpush3.bf16.msra.mxu1 %v1660_v59  ;;  %v1690_v4 = vpack.c.bf16 %v59_v3, %v58_v2  ;;  %v60_v5 = vld [vmem:[%s1918_s9 + $0x50] sm:$0xff]  ;;  %v62_v8 = vld [vmem:[%s1918_s9 + $0x60] sm:$0xff]  ;;  %v63_v9 = vld [vmem:[%s1918_s9 + $0x68] sm:$0xff] }
  0x1f   :  { %83 = vst [vmem:[#allocation2 + $0x10] sm:$0x1] %v82_v28  ;;  %100 = vrot.lane.b32.xlu0 %v97_v22, %s1471_s23  ;;  %1336 = vmatprep.subr.bf16.mxu1 %v1474_v20  ;;  %v1700_v7 = vpack.c.bf16 %v61_v6, %v60_v5  ;;  %v1710_v10 = vpack.c.bf16 %v63_v9, %v62_v8  ;;  %v64_v11 = vld [vmem:[%s1918_s9 + $0x70] sm:$0xff]  ;;  %v65_v12 = vld [vmem:[%s1918_s9 + $0x78] sm:$0xff]  ;;  %vm469_vm14 = vmand %vm316_vm13, %vm76_vm0 }
  0x20   :  { %250 = vmatpush1.bf16.msra.mxu0 %v1389_v29  ;;  %v1721_v14 = vpack.c.bf16 %v65_v12, %v64_v11  ;;  %v470_v15 = vld [vmem:[#allocation3 + $0x8] sm:$0x1]  ;;  %v473_v16 = vld [vmem:[#allocation3 + $0x20] sm:$0x1]  ;;  %v1402_v58 = vld [vmem:[%s1911_s2 + $0x50] sm:$0xff]  }
  0x21   :  { %251 = vmatprep.subr.bf16.mxu0 %v1473_v0  ;;  %v471_v17 = vsel %vm469_vm14, 0, %v470_v15  ;;  %v474_v18 = vsel %vm469_vm14, 0, %v473_v16  ;;  %v1401_v57 = vld [vmem:[%s1911_s2 + $0x8] sm:$0xff]   ;;  %v1403_v60 = vld [vmem:[%s1911_s2 + $0x10] sm:$0xff]   ;;  %v1405_v61 = vld [vmem:[%s1911_s2 + $0x58] sm:$0xff]  }
  0x22   :  { %1338 = vmatpush3.bf16.msra.mxu1 %v1670_v62  ;;  %472 = vst [vmem:[#allocation3 + $0x8] sm:$0x1] %v471_v17  ;;  %475 = vst [vmem:[#allocation3 + $0x20] sm:$0x1] %v474_v18  ;;  %v1404_v2 = vld [vmem:[%s1911_s2 + $0x80] sm:$0xff]   ;;  %v1411_v5 = vld [vmem:[%s1911_s2 + $0x68] sm:$0xff]  }
  0x23   :  { %v131_v39 = vld [vmem:[#allocation2 + $0x8] sm:$0x80]  ;;  %1339 = vmatprep.subr.bf16.mxu1 %v1474_v20  ;;  %v1409_v3 = vld [vmem:[%s1911_s2 + $0x20] sm:$0xff]   ;;  %v1414_v9 = vld [vmem:[%s1911_s2 + $0x70] sm:$0xff]  }
  0x24   :  { %252 = vmatpush1.bf16.msra.mxu0 %v1390_v34  ;;  %v132_v40 = vsel %vm130_vm8, 0, %v131_v39  ;;  %v134_v41 = vld [vmem:[#allocation2 + $0x18] sm:$0x80]  ;;  %v1407_v6 = vld [vmem:[%s1911_s2 + $0x88] sm:$0xff]   ;;  %v1410_v11 = vld [vmem:[%s1911_s2 + $0x90] sm:$0xff]  }
  0x25   :  { %253 = vmatprep.subr.bf16.mxu0 %v1473_v0  ;;  %133 = vst [vmem:[#allocation2 + $0x8] sm:$0x80] %v132_v40  ;;  %v135_v43 = vsel %vm130_vm8, 0, %v134_v41  ;;  %v107_v50 = vld [vmem:[#allocation2] sm:$0xff]  ;;  %v1412_v8 = vld [vmem:[%s1911_s2 + $0x28] sm:$0xff]   ;;  %v1415_v12 = vld [vmem:[%s1911_s2 + $0x30] sm:$0xff]  }
  0x26   :  { %136 = vst [vmem:[#allocation2 + $0x18] sm:$0x80] %v135_v43  ;;  %v110_v54 = vld [vmem:[#allocation2 + $0x10] sm:$0xff]  ;;  %v1417_v15 = vld [vmem:[%s1911_s2 + $0x78] sm:$0xff]   ;;  %vm1843_vm6 = vmand %vm492_vm5, %vm105_vm10 }
  0x27   :  { %v1413_v16 = vld [vmem:[%s1911_s2 + $0x98] sm:$0xff]   ;;  %v1808_v18 = vld [vmem:[#allocation4] sm:$0xff]   ;;  %vm1848_vm8 = vmand %vm492_vm5, %vm120_vm3  ;;  %vm513_vm3 = vcmask 1047559  }
  0x28   :  { %254 = vmatpush1.bf16.msra.mxu0 %v1391_v38  ;;  %v1418_v17 = vld [vmem:[%s1911_s2 + $0x38] sm:$0xff]   ;;  %vm514_vm9 = vmand %vm513_vm3, %vm129_vm7 }
  0x29   :  { %255 = vmatprep.subr.bf16.mxu0 %v1473_v0 }
  0x2c   :  { %256 = vmatpush1.bf16.msra.mxu0 %v1392_v42  ;;  %v138_v45 = vld [vmem:[#allocation2 + $0x8] sm:$0xff] }
  0x2d   :  { %257 = vmatprep.subr.bf16.mxu0 %v1473_v0  ;;  %1109 = vmatprep.mubr.msk.bf16.mxu0 %vm72_vm1, %v138_v45  ;;  %v140_v52 = vld [vmem:[#allocation2 + $0x18] sm:$0xff] }
  0x30   :  { %258 = vmatpush1.bf16.msra.mxu0 %v1393_v44 }
  0x31   :  { %259 = vmatprep.subr.bf16.mxu0 %v1473_v0 }
  0x34   :  { %260 = vmatpush1.bf16.msra.mxu0 %v1394_v46 }
  0x35   :  { %261 = vmatprep.subr.bf16.mxu0 %v1473_v0 }
  0x38   :  { %262 = vmatpush1.bf16.msra.mxu0 %v1395_v47 }
  0x39   :  { %263 = vmatprep.subr.bf16.mxu0 %v1473_v0 }
  0x3c   :  { %264 = vmatpush1.bf16.msra.mxu0 %v1396_v48 }
  0x3d   :  { %265 = vmatprep.subr.bf16.mxu0 %v1473_v0  ;;  %v57_v0 = vld [vmem:[%s1918_s9 + $0x38] sm:$0xff] }
  0x3e   :  { %v1680_v1 = vpack.c.bf16 %v57_v0, %v56_v63  ;;  %v1406_v63 = vld [vmem:[%s1911_s2 + $0x18] sm:$0xff]   ;;  %v1408_v0 = vld [vmem:[%s1911_s2 + $0x60] sm:$0xff]  }
  0x40   :  { %266 = vmatpush1.bf16.msra.mxu0 %v1397_v49  ;;  %1341 = vmatpush3.bf16.msra.mxu1 %v1680_v1 }
  0x41   :  { %1342 = vmatprep.subr.bf16.mxu1 %v1474_v20  ;;  %1263 = vmatprep.subr.bf16.mxu0 %v1404_v2 }
  0x44   :  { %1344 = vmatpush3.bf16.msra.mxu1 %v1690_v4 }
  0x45   :  { %1345 = vmatprep.subr.bf16.mxu1 %v1474_v20 }
  0x48   :  { %1347 = vmatpush3.bf16.msra.mxu1 %v1700_v7 }
  0x49   :  { %1348 = vmatprep.subr.bf16.mxu1 %v1474_v20 }
  0x4c   :  { %1350 = vmatpush3.bf16.msra.mxu1 %v1710_v10 }
  0x4d   :  { %1351 = vmatprep.subr.bf16.mxu1 %v1474_v20 }
  0x50   :  { %1353 = vmatpush3.bf16.msra.mxu1 %v1721_v14 }
  0x8d   :  { %v99_v51 = vpop.permute.xlu0 %98 }
  0x8e   :  { %v1645_v53 = vsel %vm106_vm11, %v99_v51, %v107_v50 }
  0x8f   :  { %109 = vst [vmem:[#allocation2] sm:$0xff] %v1645_v53  ;;  %276 = vmatmul.mubr.bf16.vlgmr.msra.gmra.mrb[0].mxu0 %v1645_v53 }
  0x90   :  { %1110 = vmatprep.mubr.msk.bf16.mxu0 %vm72_vm1, %v140_v52  ;;  %v1398_v52 = vld [vmem:[%s1911_s2 + $0x40] sm:$0xff]   ;;  %1264 = vmatpush3.bf16.msra.mxu0 %v1404_v2 }
  0x91   :  { %v101_v55 = vpop.permute.xlu0 %100  ;;  %1167 = vmatprep.subr.bf16.mxu1 %v1398_v52  ;;  %1265 = vmatprep.subr.bf16.mxu0 %v1407_v6 }
  0x92   :  { %v1650_v56 = vsel %vm106_vm11, %v101_v55, %v110_v54  ;;  %v1399_v54 = vld [vmem:[%s1911_s2] sm:$0xff]   ;;  %v1400_v55 = vld [vmem:[%s1911_s2 + $0x48] sm:$0xff]  }
  0x93   :  { %112 = vst [vmem:[#allocation2 + $0x10] sm:$0xff] %v1650_v56 }
  0x94   :  { %1266 = vmatpush3.bf16.msra.mxu0 %v1407_v6 }
  0x95   :  { %1267 = vmatprep.subr.bf16.mxu0 %v1410_v11 }
  0x97   :  { %284 = vmatmul.mubr.bf16.gmra.mrb[4].mxu0 %v1650_v56 }
  0x98   :  { %1268 = vmatpush3.bf16.msra.mxu0 %v1410_v11 }
  0x99   :  { %1269 = vmatprep.subr.bf16.mxu0 %v1413_v16 }
  0x9c   :  { %1270 = vmatpush3.bf16.msra.mxu0 %v1413_v16 }
 0x162   :  { %v1727_v19 = vpop.f32.mrb[0].mxu0 }
 0x163   :  { %v279_v21 = vpop.f32.mrb[1].mxu0  ;;  %v303_v23 = vmul.f32 %v1727_v19, %v1727_v19 }
 0x164   :  { %v1729_v22 = vpop.f32.mrb[2].mxu0  ;;  %v1416_v21 = vld [vmem:[%s1911_s2 + $0xa0] sm:$0xff]  }
 0x165   :  { %v294_v24 = vadd.f32 %v1729_v22, %v1727_v19  ;;  %v304_v25 = vmul.f32 %v1729_v22, %v1729_v22  ;;  %v282_v26 = vpop.f32.mrb[3].mxu0  ;;  %1271 = vmatprep.subr.bf16.mxu0 %v1416_v21 }
 0x166   :  { %1272 = vmatpush3.bf16.msra.mxu0 %v1416_v21 }
 0x167   :  { %v307_v27 = vadd.f32 %v304_v25, %v303_v23  ;;  %v1419_v23 = vld [vmem:[%s1911_s2 + $0xa8] sm:$0xff]   ;;  %v1423_v25 = vld [vmem:[%s1911_s2 + $0xb8] sm:$0xff]  }
 0x168   :  { %1273 = vmatprep.subr.bf16.mxu0 %v1419_v23 }
 0x16a   :  { %v1737_v28 = vpop.f32.mrb[4].mxu0  ;;  %1274 = vmatpush3.bf16.msra.mxu0 %v1419_v23 }
 0x16b   :  { %v295_v29 = vadd.f32 %v294_v24, %v1737_v28  ;;  %v305_v30 = vmul.f32 %v1737_v28, %v1737_v28  ;;  %v287_v31 = vpop.f32.mrb[5].mxu0  ;;  %v1421_v24 = vld [vmem:[%s1911_s2 + $0xb0] sm:$0xff]  }
 0x16c   :  { %v1742_v32 = vpop.f32.mrb[6].mxu0  ;;  %1275 = vmatprep.subr.bf16.mxu0 %v1421_v24 }
 0x16d   :  { %v308_v33 = vadd.f32 %v307_v27, %v305_v30  ;;  %v296_v34 = vadd.f32 %v295_v29, %v1742_v32  ;;  %v306_v35 = vmul.f32 %v1742_v32, %v1742_v32  ;;  %v290_v36 = vpop.f32.mrb[7].mxu0 }
 0x16e   :  { %1276 = vmatpush3.bf16.msra.mxu0 %v1421_v24 }
 0x16f   :  { %v297_v38 = vrot.slane %v296_v34, 4  ;;  %v309_v39 = vadd.f32 %v308_v33, %v306_v35  ;;  %1277 = vmatprep.subr.bf16.mxu0 %v1423_v25  ;;  %v1477_v35 = vmov 1966171168  }
 0x170   :  { %v398_v36 = vunpack.c.l.s4 %v1477_v35 }
 0x171   :  { %v298_v40 = vadd.f32 %v297_v38, %v296_v34  ;;  %v310_v41 = vrot.slane %v309_v39, 4  ;;  %v400_v38 = vlaneseq }
 0x172   :  { %1278 = vmatpush3.bf16.msra.mxu0 %v1423_v25 }
 0x173   :  { %v299_v42 = vrot.slane %v298_v40, 2  ;;  %v311_v43 = vadd.f32 %v310_v41, %v309_v39  ;;  %1354 = vmatprep.subr.bf16.mxu0 %v1474_v20  ;;  %v399_v39 = vunpack.c.0.s8 %v398_v36 }
 0x175   :  { %v300_v44 = vadd.f32 %v299_v42, %v298_v40  ;;  %v312_v45 = vrot.slane %v311_v43, 2  ;;  %v401_v40 = vshrl.u32 %v400_v38, 7 }
 0x177   :  { %v301_v46 = vrot.slane %v300_v44, 1  ;;  %v313_v47 = vadd.f32 %v312_v45, %v311_v43  ;;  %v1824_v41 = vsub.s32 %v399_v39, %v401_v40  ;;  %v292_v45 = vld [vmem:[%s1913_s4] sm:$0x1] }
 0x179   :  { %v314_v48 = vrot.slane %v313_v47, 1  ;;  %v302_v49 = vadd.f32 %v301_v46, %v300_v44 }
 0x17b   :  { %v315_v50 = vadd.f32 %v314_v48, %v313_v47  ;;  %v1831_v47 = vsub.s32 0, %v401_v40 }
 0x17d   :  { %v317_v51 = vsel %vm316_vm13, %v302_v49, %v315_v50  ;;  %v293_v49 = vld [vmem:[%s1914_s5] sm:$0x1] }
 0x17e   :  { %1261 = vmatmul.mubr.f32.vlgmr.msra.gmra.mrb[0].mxu1 %v317_v51 }
 0x17f   :  { %1168 = vmatpush3.bf16.msra.mxu1 %v1399_v54 }
 0x180   :  { %1169 = vmatprep.subr.bf16.mxu1 %v1400_v55 }
 0x183   :  { %1170 = vmatpush3.bf16.msra.mxu1 %v1401_v57 }
 0x184   :  { %1171 = vmatprep.subr.bf16.mxu1 %v1402_v58 }
 0x187   :  { %1172 = vmatpush3.bf16.msra.mxu1 %v1403_v60 }
 0x188   :  { %1173 = vmatprep.subr.bf16.mxu1 %v1405_v61 }
 0x18b   :  { %1174 = vmatpush3.bf16.msra.mxu1 %v1406_v63 }
 0x18c   :  { %1175 = vmatprep.subr.bf16.mxu1 %v1408_v0 }
 0x18f   :  { %1176 = vmatpush3.bf16.msra.mxu1 %v1409_v3 }
 0x190   :  { %1177 = vmatprep.subr.bf16.mxu1 %v1411_v5 }
 0x193   :  { %1178 = vmatpush3.bf16.msra.mxu1 %v1412_v8 }
 0x194   :  { %1179 = vmatprep.subr.bf16.mxu1 %v1414_v9 }
 0x197   :  { %1180 = vmatpush3.bf16.msra.mxu1 %v1415_v12 }
 0x198   :  { %1181 = vmatprep.subr.bf16.mxu1 %v1417_v15 }
 0x19b   :  { %1182 = vmatpush3.bf16.msra.mxu1 %v1418_v17 }
 0x19c   :  { %1283 = vmatprep.subr.bf16.mxu1 %v1808_v18 }
 0x251   :  { %v384_v26 = vpop.f32.mrb[0].mxu1 }
 0x252   :  { %v388_v27 = vmul.f32 0.001953125, %v384_v26  ;;  %v1262_v29 = vpop.f32.mrb[1].mxu1 }
 0x254   :  { %v389_v30 = vmul.f32 %v388_v27, %v388_v27 }
 0x256   :  { %v391_v31 = vrot.slane %v389_v30, 7 }
 0x258   :  { %v393_v33 = vsub.f32 %v388_v27, %v391_v31 }
 0x25a   :  { %v394_v34 = vadd.f32 1e-05, %v393_v33 }
 0x25c   :  { %1426 = vrsqrt.f32 %v394_v34 }
 0x266   :  { %v1427_v42 = vpop.eup %1426 }
 0x267   :  { %v403_v43 = vrot.slane %v1427_v42, %v1824_v41 }
 0x269   :  { %v404_v44 = vcombine.high %v403_v43, %v403_v43 }
 0x26b   :  { %v411_v46 = vrot.slane %v404_v44, %v1824_v41 }
 0x26d   :  { %v413_v48 = vmul.f32 %v411_v46, %v292_v45  ;;  %v494_v46 = vld [vmem:[#allocation3 + $0x8] sm:$0xff] }
 0x26f   :  { %v414_v50 = vmul.f32 %v413_v48, %v388_v27  ;;  %v420_v51 = vrot.slane %v413_v48, %v1831_v47  ;;  %v507_v48 = vld [vmem:[#allocation3 + $0x10] sm:$0xff] }
 0x271   :  { %v415_v52 = vsub.f32 %v293_v49, %v414_v50  ;;  %v422_v54 = vmul.f32 %v420_v51, %v1727_v19  ;;  %v423_v55 = vmul.f32 %v420_v51, %v1729_v22  ;;  %v424_v57 = vmul.f32 %v420_v51, %v1737_v28 }
 0x272   :  { %v425_v58 = vmul.f32 %v420_v51, %v1742_v32 }
 0x273   :  { %v430_v60 = vrot.slane %v415_v52, %v1831_v47 }
 0x275   :  { %v432_v61 = vadd.f32 %v430_v60, %v422_v54  ;;  %v433_v63 = vadd.f32 %v430_v60, %v423_v55  ;;  %v434_v0 = vadd.f32 %v430_v60, %v424_v57  ;;  %v435_v2 = vadd.f32 %v430_v60, %v425_v58  ;;  %v497_v54 = vld [vmem:[#allocation3 + $0x20] sm:$0xff]  ;;  %v510_v55 = vld [vmem:[#allocation3 + $0x28] sm:$0xff] }
 0x277   :  { %v440_v3 = vmul.f32 1.442695, %v432_v61  ;;  %v442_v5 = vmul.f32 1.442695, %v433_v63  ;;  %v444_v6 = vmul.f32 1.442695, %v434_v0 }
 0x278   :  { %v446_v8 = vmul.f32 1.442695, %v435_v2  ;;  %vm436_vm15 = vcmp.gt.f32.partialorder %v432_v61, 0.0  ;;  %vm437_vm0 = vcmp.gt.f32.partialorder %v433_v63, 0.0  ;;  %vm438_vm2 = vcmp.gt.f32.partialorder %v434_v0, 0.0 }
 0x279   :  { %1428 = vpow2.f32 %v440_v3  ;;  %vm439_vm4 = vcmp.gt.f32.partialorder %v435_v2, 0.0  ;;  %v1424_v3 = vld [vmem:[#allocation4 + $0x10] sm:$0xff]  }
 0x27a   :  { %1430 = vpow2.f32 %v442_v5 }
 0x27b   :  { %1432 = vpow2.f32 %v444_v6  ;;  %v1425_v6 = vld [vmem:[#allocation4 + $0x18] sm:$0xff]  }
 0x27c   :  { %1434 = vpow2.f32 %v446_v8 }
 0x283   :  { %v1429_v19 = vpop.eup %1428 }
 0x284   :  { %v1431_v22 = vpop.eup %1430  ;;  %v1111_v9 = vadd.f32 -1.0, %v1429_v19 }
 0x285   :  { %v1433_v28 = vpop.eup %1432  ;;  %v1112_v11 = vadd.f32 -1.0, %v1431_v22 }
 0x286   :  { %v1435_v32 = vpop.eup %1434  ;;  %v1113_v12 = vadd.f32 -1.0, %v1433_v28  ;;  %v452_v15 = vmul.f32 1.6732632, %v1111_v9 }
 0x287   :  { %v1114_v16 = vadd.f32 -1.0, %v1435_v32  ;;  %v453_v17 = vmul.f32 1.6732632, %v1112_v11 }
 0x288   :  { %v454_v21 = vmul.f32 1.6732632, %v1113_v12  ;;  %v456_v23 = vsel %vm436_vm15, %v432_v61, %v452_v15 }
 0x289   :  { %v455_v24 = vmul.f32 1.6732632, %v1114_v16  ;;  %v457_v25 = vsel %vm437_vm0, %v433_v63, %v453_v17  ;;  %v460_v26 = vmul.f32 1.050701, %v456_v23  ;;  %v1422_v63 = vld [vmem:[#allocation4 + $0x8] sm:$0xff]  }
 0x28a   :  { %v458_v27 = vsel %vm438_vm2, %v434_v0, %v454_v21  ;;  %v461_v29 = vmul.f32 1.050701, %v457_v25 }
 0x28b   :  { %v459_v30 = vsel %vm439_vm4, %v435_v2, %v455_v24  ;;  %v462_v31 = vmul.f32 1.050701, %v458_v27 }
 0x28c   :  { %v463_v33 = vmul.f32 1.050701, %v459_v30  ;;  %v464_v34 = vpack.c.bf16 %v461_v29, %v460_v26 }
 0x28e   :  { %v465_v35 = vpack.c.bf16 %v463_v33, %v462_v31  ;;  %v477_v36 = vshrl.u32 %v464_v34, 16  ;;  %v480_v38 = vshll.u32 %v464_v34, 16 }
 0x290   :  { %v479_v40 = vrot.slane %v477_v36, 7  ;;  %v484_v42 = vshrl.u32 %v465_v35, 16  ;;  %v487_v43 = vshll.u32 %v465_v35, 16  ;;  %v500_v44 = vrot.slane %v480_v38, 1 }
 0x292   :  { %v482_v49 = vor.u32 %v480_v38, %v479_v40  ;;  %v486_v50 = vrot.slane %v484_v42, 7  ;;  %v501_v51 = vor.u32 %v500_v44, %v477_v36  ;;  %v502_v52 = vrot.slane %v487_v43, 1 }
 0x294   :  { %v489_v57 = vor.u32 %v487_v43, %v486_v50  ;;  %v495_v58 = vsel %vm1843_vm6, %v482_v49, %v494_v46  ;;  %v503_v60 = vor.u32 %v502_v52, %v484_v42  ;;  %v508_v61 = vsel %vm1848_vm8, %v501_v51, %v507_v48 }
 0x295   :  { %496 = vst [vmem:[#allocation3 + $0x8] sm:$0xff] %v495_v58  ;;  %509 = vst [vmem:[#allocation3 + $0x10] sm:$0xff] %v508_v61  ;;  %751 = vmatprep.mubr.bf16.mxu1 %v495_v58 }
 0x296   :  { %v498_v0 = vsel %vm1843_vm6, %v489_v57, %v497_v54  ;;  %v511_v2 = vsel %vm1848_vm8, %v503_v60, %v510_v55  ;;  %752 = vmatmul.mubr.bf16.vlgmr.msra.gmra.mrb[4].mxu1 %v464_v34 }
 0x297   :  { %512 = vst [vmem:[#allocation3 + $0x28] sm:$0xff] %v511_v2  ;;  %499 = vst [vmem:[#allocation3 + $0x20] sm:$0xff] %v498_v0  ;;  %759 = vmatprep.mubr.bf16.mxu1 %v498_v0  ;;  %1284 = vmatpush3.bf16.msra.mxu1 %v1808_v18 }
 0x298   :  { %1285 = vmatprep.subr.bf16.mxu1 %v1422_v63 }
 0x29b   :  { %1286 = vmatpush3.bf16.msra.mxu1 %v1422_v63 }
 0x29c   :  { %v515_v5 = vld [vmem:[#allocation3 + $0x10] sm:$0x80]  ;;  %1287 = vmatprep.subr.bf16.mxu1 %v1424_v3 }
 0x29d   :  { %v516_v8 = vsel %vm514_vm9, 0, %v515_v5 }
 0x29e   :  { %760 = vmatmul.mubr.bf16.gmra.mrb[8].mxu1 %v465_v35  ;;  %517 = vst [vmem:[#allocation3 + $0x10] sm:$0x80] %v516_v8  ;;  %v518_v19 = vld [vmem:[#allocation3 + $0x28] sm:$0x80]  ;;  %v913_v8 = vld [vmem:[%s1915_s6] sm:$0x1] }
 0x29f   :  { %v519_v22 = vsel %vm514_vm9, 0, %v518_v19  ;;  %1288 = vmatpush3.bf16.msra.mxu1 %v1424_v3  ;;  %1291 = vmatprep.mubr.msk.bf16.mxu1 %vm72_vm1, %v1645_v53 }
 0x2a0   :  { %520 = vst [vmem:[#allocation3 + $0x28] sm:$0x80] %v519_v22  ;;  %1289 = vmatprep.subr.bf16.mxu1 %v1425_v6 }
 0x2a3   :  { %1290 = vmatpush3.bf16.msra.mxu1 %v1425_v6 }
 0x2a5   :  { %v523_v18 = vld [vmem:[#allocation3 + $0x10] sm:$0xff] }
 0x2a6   :  { %1279 = vmatprep.mubr.bf16.mxu0 %v523_v18  ;;  %1292 = vmatmul.mubr.msk.bf16.vlgmr.msra.gmra.mrb[12].mxu1 %vm72_vm1, %v1650_v56  ;;  %v914_v18 = vld [vmem:[%s1916_s7] sm:$0x1] }
 0x2a7   :  { %v526_v9 = vld [vmem:[#allocation3 + $0x28] sm:$0xff] }
 0x2a8   :  { %1280 = vmatmul.mubr.bf16.vlgmr.msra.gmra.mrb[8].mxu0 %v526_v9 }
 0x2a9   :  { %1356 = vmatpush3.bf16.msra.mxu0 %v1609_v37  ;;  %1327 = vmatprep.mubr.msk.f32.mxu0 %vm1475_vm12, %v1476_v13 }
 0x2aa   :  { %1357 = vmatprep.subr.bf16.mxu0 %v1474_v20 }
 0x2ad   :  { %1359 = vmatpush3.bf16.msra.mxu0 %v1660_v59 }
 0x2ae   :  { %1360 = vmatprep.subr.bf16.mxu0 %v1474_v20 }
 0x2b1   :  { %1362 = vmatpush3.bf16.msra.mxu0 %v1670_v62 }
 0x2b2   :  { %1363 = vmatprep.subr.bf16.mxu0 %v1474_v20 }
 0x2b5   :  { %1365 = vmatpush3.bf16.msra.mxu0 %v1680_v1 }
 0x2b6   :  { %1366 = vmatprep.subr.bf16.mxu0 %v1474_v20 }
 0x2b9   :  { %1368 = vmatpush3.bf16.msra.mxu0 %v1690_v4 }
 0x2ba   :  { %1369 = vmatprep.subr.bf16.mxu0 %v1474_v20 }
 0x2bd   :  { %1371 = vmatpush3.bf16.msra.mxu0 %v1700_v7 }
 0x2be   :  { %1372 = vmatprep.subr.bf16.mxu0 %v1474_v20 }
 0x2c1   :  { %1374 = vmatpush3.bf16.msra.mxu0 %v1710_v10 }
 0x2c2   :  { %1375 = vmatprep.subr.bf16.mxu0 %v1474_v20 }
 0x2c5   :  { %1377 = vmatpush3.bf16.msra.mxu0 %v1721_v14 }
 0x369   :  { %v1183_v37 = vpop.f32.mrb[4].mxu1 }
 0x36a   :  { %v1184_v53 = vpop.f32.mrb[5].mxu1 }
 0x36b   :  { %v1185_v56 = vadd.f32 %v1184_v53, %v1183_v37  ;;  %v1186_v59 = vpop.f32.mrb[6].mxu1  ;;  %v1139_v53 = vld [vmem:[%s1917_s8] ss:$0 sm:$0xff] }
 0x36c   :  { %v1187_v62 = vpop.f32.mrb[7].mxu1 }
 0x36d   :  { %v1188_v1 = vadd.f32 %v1187_v62, %v1186_v59 }
 0x371   :  { %v1189_v13 = vpop.f32.mrb[8].mxu1 }
 0x372   :  { %v1190_v4 = vpop.f32.mrb[9].mxu1 }
 0x373   :  { %v1191_v28 = vadd.f32 %v1190_v4, %v1189_v13  ;;  %v1192_v11 = vpop.f32.mrb[10].mxu1 }
 0x374   :  { %v1193_v32 = vpop.f32.mrb[11].mxu1 }
 0x375   :  { %v1194_v7 = vadd.f32 %v1193_v32, %v1192_v11 }
 0x379   :  { %v1293_v12 = vpop.f32.mrb[12].mxu1 }
 0x37a   :  { %v898_v15 = vpop.f32.mrb[13].mxu1 }
 0x37b   :  { %v1281_v16 = vpop.f32.mrb[8].mxu0  ;;  %v1294_v10 = vpop.f32.mrb[14].mxu1 }
 0x37c   :  { %v811_v17 = vadd.f32 %v1281_v16, %v1191_v28  ;;  %v802_v20 = vpop.f32.mrb[9].mxu0  ;;  %v901_v21 = vpop.f32.mrb[15].mxu1  ;;  %v899_v28 = vadd.f32 %v1139_v53, %v898_v15  ;;  %v910_v11 = vadd.f32 %v1294_v10, %v1139_v53 }
 0x37d   :  { %v803_v14 = vadd.f32 %v1185_v56, %v802_v20  ;;  %v1282_v23 = vpop.f32.mrb[10].mxu0  ;;  %v902_v32 = vadd.f32 %v1139_v53, %v901_v21 }
 0x37e   :  { %v814_v24 = vadd.f32 %v1282_v23, %v1194_v7  ;;  %v805_v25 = vpop.f32.mrb[11].mxu0  ;;  %v926_v31 = vmul.f32 %v811_v17, %v811_v17 }
 0x37f   :  { %v806_v26 = vadd.f32 %v1188_v1, %v805_v25  ;;  %v924_v27 = vmul.f32 %v803_v14, %v803_v14 }
 0x380   :  { %v927_v35 = vmul.f32 %v814_v24, %v814_v24 }
 0x381   :  { %v915_v29 = vadd.f32 %v806_v26, %v803_v14  ;;  %v925_v30 = vmul.f32 %v806_v26, %v806_v26 }
 0x383   :  { %v916_v33 = vadd.f32 %v915_v29, %v811_v17  ;;  %v928_v34 = vadd.f32 %v925_v30, %v924_v27 }
 0x385   :  { %v917_v36 = vadd.f32 %v916_v33, %v814_v24  ;;  %v929_v38 = vadd.f32 %v928_v34, %v926_v31 }
 0x387   :  { %v918_v39 = vrot.slane %v917_v36, 4  ;;  %v930_v40 = vadd.f32 %v929_v38, %v927_v35 }
 0x389   :  { %v919_v42 = vadd.f32 %v918_v39, %v917_v36  ;;  %v931_v43 = vrot.slane %v930_v40, 4 }
 0x38b   :  { %v920_v44 = vrot.slane %v919_v42, 2  ;;  %v932_v45 = vadd.f32 %v931_v43, %v930_v40 }
 0x38d   :  { %v921_v46 = vadd.f32 %v920_v44, %v919_v42  ;;  %v933_v48 = vrot.slane %v932_v45, 2 }
 0x38f   :  { %v922_v49 = vrot.slane %v921_v46, 1  ;;  %v934_v50 = vadd.f32 %v933_v48, %v932_v45 }
 0x391   :  { %v935_v51 = vrot.slane %v934_v50, 1  ;;  %v923_v52 = vadd.f32 %v922_v49, %v921_v46 }
 0x393   :  { %v936_v54 = vadd.f32 %v935_v51, %v934_v50 }
 0x395   :  { %v937_v55 = vsel %vm316_vm13, %v923_v52, %v936_v54 }
 0x396   :  { %1328 = vmatmul.mubr.f32.vlgmr.msra.gmra.mrb[12].mxu0 %v937_v55 }
 0x469   :  { %v1004_v57 = vpop.f32.mrb[12].mxu0 }
 0x46a   :  { %v1008_v58 = vmul.f32 0.001953125, %v1004_v57  ;;  %v1329_v60 = vpop.f32.mrb[13].mxu0 }
 0x46c   :  { %v1009_v61 = vmul.f32 %v1008_v58, %v1008_v58 }
 0x46e   :  { %v1011_v63 = vrot.slane %v1009_v61, 7 }
 0x470   :  { %v1013_v0 = vsub.f32 %v1008_v58, %v1011_v63 }
 0x472   :  { %v1014_v2 = vadd.f32 1e-05, %v1013_v0 }
 0x474   :  { %1436 = vrsqrt.f32 %v1014_v2 }
 0x47e   :  { %v1437_v3 = vpop.eup %1436 }
 0x47f   :  { %v1023_v5 = vrot.slane %v1437_v3, %v1824_v41 }
 0x481   :  { %v1024_v6 = vcombine.high %v1023_v5, %v1023_v5 }
 0x483   :  { %v1031_v19 = vrot.slane %v1024_v6, %v1824_v41  ;;  %v907_v41 = vadd.f32 %v1293_v12, %v1139_v53 }
 0x485   :  { %v1033_v22 = vmul.f32 %v1031_v19, %v913_v8 }
 0x487   :  { %v1034_v9 = vmul.f32 %v1033_v22, %v1008_v58  ;;  %v1040_v37 = vrot.slane %v1033_v22, %v1831_v47 }
 0x489   :  { %v1035_v56 = vsub.f32 %v914_v18, %v1034_v9  ;;  %v1042_v59 = vmul.f32 %v1040_v37, %v803_v14  ;;  %v1043_v62 = vmul.f32 %v1040_v37, %v806_v26  ;;  %v1044_v1 = vmul.f32 %v1040_v37, %v811_v17 }
 0x48a   :  { %v1045_v13 = vmul.f32 %v1040_v37, %v814_v24 }
 0x48b   :  { %v1050_v4 = vrot.slane %v1035_v56, %v1831_v47 }
 0x48d   :  { %v1052_v7 = vadd.f32 %v1050_v4, %v1042_v59  ;;  %v1053_v16 = vadd.f32 %v1050_v4, %v1043_v62  ;;  %v1054_v20 = vadd.f32 %v1050_v4, %v1044_v1  ;;  %v1055_v23 = vadd.f32 %v1050_v4, %v1045_v13 }
 0x48f   :  { %v1056_v25 = vadd.f32 %v1052_v7, %v899_v28  ;;  %v1057_v27 = vadd.f32 %v1053_v16, %v902_v32  ;;  %v1058_v29 = vadd.f32 %v1054_v20, %v907_v41  ;;  %v1059_v30 = vadd.f32 %v1055_v23, %v910_v11 }
 0x491   :  { %v1064_v31 = vmul.f32 1.442695, %v1056_v25  ;;  %v1066_v33 = vmul.f32 1.442695, %v1057_v27  ;;  %v1068_v14 = vmul.f32 1.442695, %v1058_v29 }
 0x492   :  { %v1070_v26 = vmul.f32 1.442695, %v1059_v30  ;;  %vm1060_vm1 = vcmp.gt.f32.partialorder %v1056_v25, 0.0  ;;  %vm1061_vm7 = vcmp.gt.f32.partialorder %v1057_v27, 0.0  ;;  %vm1062_vm10 = vcmp.gt.f32.partialorder %v1058_v29, 0.0 }
 0x493   :  { %1438 = vpow2.f32 %v1064_v31  ;;  %vm1063_vm11 = vcmp.gt.f32.partialorder %v1059_v30, 0.0 }
 0x494   :  { %1440 = vpow2.f32 %v1066_v33 }
 0x495   :  { %1442 = vpow2.f32 %v1068_v14 }
 0x496   :  { %1444 = vpow2.f32 %v1070_v26 }
 0x49d   :  { %v1439_v47 = vpop.eup %1438 }
 0x49e   :  { %v1441_v12 = vpop.eup %1440  ;;  %v1146_v15 = vadd.f32 -1.0, %v1439_v47 }
 0x49f   :  { %v1443_v10 = vpop.eup %1442  ;;  %v1147_v17 = vadd.f32 -1.0, %v1441_v12 }
 0x4a0   :  { %v1445_v21 = vpop.eup %1444  ;;  %v1148_v24 = vadd.f32 -1.0, %v1443_v10  ;;  %v1076_v34 = vmul.f32 1.6732632, %v1146_v15 }
 0x4a1   :  { %v1149_v35 = vadd.f32 -1.0, %v1445_v21  ;;  %v1077_v36 = vmul.f32 1.6732632, %v1147_v17 }
 0x4a2   :  { %v1078_v38 = vmul.f32 1.6732632, %v1148_v24  ;;  %v1080_v39 = vsel %vm1060_vm1, %v1056_v25, %v1076_v34 }
 0x4a3   :  { %v1079_v40 = vmul.f32 1.6732632, %v1149_v35  ;;  %v1081_v42 = vsel %vm1061_vm7, %v1057_v27, %v1077_v36  ;;  %v1084_v43 = vmul.f32 1.050701, %v1080_v39 }
 0x4a4   :  { %v1082_v44 = vsel %vm1062_vm10, %v1058_v29, %v1078_v38  ;;  %v1085_v45 = vmul.f32 1.050701, %v1081_v42 }
 0x4a5   :  { %v1083_v46 = vsel %vm1063_vm11, %v1059_v30, %v1079_v40  ;;  %v1086_v48 = vmul.f32 1.050701, %v1082_v44  ;;  %1088 = vst [vmem:[%s1919_s10] sm:$0xff] %v1084_v43 }
 0x4a6   :  { %v1087_v49 = vmul.f32 1.050701, %v1083_v46  ;;  %1089 = vst [vmem:[%s1919_s10 + $0x8] sm:$0xff] %v1085_v45 }
 0x4a7   :  { %1090 = vst [vmem:[%s1919_s10 + $0x10] sm:$0xff] %v1086_v48 }
 0x4a8   :  { %1091 = vst [vmem:[%s1919_s10 + $0x18] sm:$0xff] %v1087_v49 }
 0x4a9   :  { %1096 = vsyncpa [#allocation5], 1 }

</bundles_post_ra>
